<compile_context>
chip_gen: v7x
topology: tpu7x:2x2x1
jax: 0.10.0
libtpu: 0.0.40
codegen_flags: <defaults>
</compile_context>

<pallas_src>
import functools

import jax
import jax.numpy as jnp
from jax import lax
from jax.experimental import pallas as pl
from jax.experimental.pallas import tpu as pltpu


def _layer_norm(x, gamma, beta, eps=1e-5):
    mu = jnp.mean(x, axis=-1, keepdims=True)
    var = jnp.mean((x - mu) ** 2, axis=-1, keepdims=True)
    return (x - mu) * lax.rsqrt(var + eps) * gamma + beta


def encoder_stack_kernel(num_heads,
                         x_ref, bias_ref,
                         wqkv_ref, bqkv_ref, wo_ref, bo_ref,
                         g1_ref, be1_ref, w1_ref, b1_ref,
                         w2_ref, b2_ref, g2_ref, be2_ref,
                         o_ref, act_ref):
    l = pl.program_id(1)                       # layer index (inner, arbitrary)
    _, S, E = x_ref.shape                      # x block is (1, S, E)
    NH = num_heads

    # Load this batch element into the resident VMEM scratch on layer 0.
    @pl.when(l == 0)
    def _():
        act_ref[...] = x_ref[0]

    x = act_ref[...]                           # (S, E) float32

    # ---- batched QKV projection (head-major weights, scale pre-folded) ----
    wqkv = wqkv_ref[0]                         # (3*NH, E, dh)
    xb = jnp.broadcast_to(x.astype(wqkv.dtype), (3 * NH,) + x.shape)
    qkv = jnp.einsum('gse,ged->gsd', xb, wqkv,
                     preferred_element_type=jnp.float32) + bqkv_ref[0]
    qh = qkv[:NH]                              # (NH, S, dh)   leading-axis slices
    kh = qkv[NH:2 * NH]
    vh = qkv[2 * NH:]

    # ---- single batched attention path (one softmax for all heads) --------
    s = jnp.einsum('nqd,nkd->nqk', qh, kh,
                   preferred_element_type=jnp.float32)          # (NH, S, S)
    s = s + bias_ref[...]                      # additive key mask, one broadcast
    s = s - jnp.max(s, axis=-1, keepdims=True)
    p = jnp.exp(s)
    p = p * pl.reciprocal(jnp.sum(p, axis=-1, keepdims=True), approx=True)
    ctx = jnp.einsum('nqk,nkd->nqd', p, vh,
                     preferred_element_type=jnp.float32)        # (NH, S, dh)

    # ---- output projection folded per head; head-sum replaces lane concat --
    wo = wo_ref[0]                             # (NH, dh, E)
    proj = jnp.einsum('nsd,nde->nse', ctx.astype(wo.dtype), wo,
                      preferred_element_type=jnp.float32)       # (NH, S, E)
    attn = jnp.sum(proj, axis=0) + bo_ref[0]                    # (S, E)

    h1 = _layer_norm(x + attn, g1_ref[0], be1_ref[0])

    # ---- position-wise feed-forward ---------------------------------------
    w1 = w1_ref[0]
    w2 = w2_ref[0]
    ff = jnp.dot(h1.astype(w1.dtype), w1,
                 preferred_element_type=jnp.float32) + b1_ref[0]
    ff = jnp.maximum(ff, 0.0)
    ff = jnp.dot(ff.astype(w2.dtype), w2,
                 preferred_element_type=jnp.float32) + b2_ref[0]

    out = _layer_norm(h1 + ff, g2_ref[0], be2_ref[0])
    act_ref[...] = out                         # carry to next layer

    @pl.when(l == pl.num_programs(1) - 1)
    def _():
        o_ref[0] = out


def encoder_forward(x, h_mask, stacked_params, num_heads, *,
                    weight_dtype=jnp.float32):
    """Whole Encoder stack in a single pallas_call (mirrors Encoder.forward)."""
    B, S, E = x.shape
    (wq, wk, wv, wo, bq, bk, bv, bo,
     w1, b1, w2, b2, g1, be1, g2, be2) = stacked_params
    L = wq.shape[0]
    H = w1.shape[-1]
    NH = num_heads
    dh = E // NH
    scale = 1.0 / float(dh) ** 0.5

    # ---- host-side, one-time weight prep ----------------------------------
    # head-major layouts so the kernel never slices/reshapes along lanes;
    # 1/sqrt(dh) folded into the Q weights and bias.
    def w_heads(w):                            # (L, E, E) -> (L, NH, E, dh)
        return w.reshape(L, E, NH, dh).transpose(0, 2, 1, 3)

    w_qkv_h = jnp.concatenate(
        [w_heads(wq) * scale, w_heads(wk), w_heads(wv)],
        axis=1).astype(weight_dtype)                           # (L, 3NH, E, dh)
    b_qkv_h = jnp.concatenate(
        [bq.reshape(L, NH, 1, dh) * scale,
         bk.reshape(L, NH, 1, dh),
         bv.reshape(L, NH, 1, dh)], axis=1).astype(jnp.float32)  # (L, 3NH, 1, dh)
    wo_h = wo.reshape(L, NH, dh, E).astype(weight_dtype)         # (L, NH, dh, E)

    prepped = (
        w_qkv_h, b_qkv_h, wo_h, bo.reshape(L, 1, E),
        g1.reshape(L, 1, E), be1.reshape(L, 1, E),
        w1.astype(weight_dtype), b1.reshape(L, 1, H),
        w2.astype(weight_dtype), b2.reshape(L, 1, E),
        g2.reshape(L, 1, E), be2.reshape(L, 1, E),
    )

    # additive key-padding bias computed once: 0.0 = valid, -1e9 = padded
    key_bias = ((h_mask - 1.0) * 1e9).astype(jnp.float32)        # (B, 1, S)

    def _wspec(p):
        nd = p.ndim
        return pl.BlockSpec((1,) + p.shape[1:],
                            lambda b, l, _nd=nd: (l,) + (0,) * (_nd - 1))

    in_specs = [
        pl.BlockSpec((1, S, E), lambda b, l: (b, 0, 0)),   # x (read on layer 0)
        pl.BlockSpec((1, 1, S), lambda b, l: (b, 0, 0)),   # additive key bias
    ] + [_wspec(p) for p in prepped]

    out_specs = pl.BlockSpec((1, S, E), lambda b, l: (b, 0, 0))

    kernel = functools.partial(encoder_stack_kernel, num_heads)

    return pl.pallas_call(
        kernel,
        out_shape=jax.ShapeDtypeStruct((B, S, E), jnp.float32),
        grid_spec=pltpu.PrefetchScalarGridSpec(
            num_scalar_prefetch=0,
            grid=(B, L),                       # batch parallel, layer sequential
            in_specs=in_specs,
            out_specs=out_specs,
            scratch_shapes=[pltpu.VMEM((S, E), jnp.float32)],
        ),
        compiler_params=pltpu.CompilerParams(
            dimension_semantics=("parallel", "arbitrary"),
            vmem_limit_bytes=32 * 1024 * 1024,
        ),
    )(x, key_bias, *prepped)


# ----------------------------- reference (pure JAX) --------------------------
def encoder_reference(x, h_mask, stacked_params, num_heads):
    (wq, wk, wv, wo, bq, bk, bv, bo,
     w1, b1, w2, b2, g1, be1, g2, be2) = stacked_params
    L = wq.shape[0]
    B, S, E = x.shape
    NH = num_heads
    dh = E // NH
    bias = (h_mask - 1.0) * 1e9                                  # (B, 1, S)
    h = x
    for l in range(L):
        q = (h @ wq[l] + bq[l]).reshape(B, S, NH, dh).transpose(0, 2, 1, 3)
        k = (h @ wk[l] + bk[l]).reshape(B, S, NH, dh).transpose(0, 2, 1, 3)
        v = (h @ wv[l] + bv[l]).reshape(B, S, NH, dh).transpose(0, 2, 1, 3)
        s = jnp.einsum('bhqd,bhkd->bhqk', q, k) / jnp.sqrt(dh)
        s = s + bias[:, :, None, :]
        p = jax.nn.softmax(s, axis=-1)
        ctx = jnp.einsum('bhqk,bhkd->bhqd', p, v)
        ctx = ctx.transpose(0, 2, 1, 3).reshape(B, S, E)
        attn = ctx @ wo[l] + bo[l]
        h1 = _layer_norm(h + attn, g1[l], be1[l])
        ff = jnp.maximum(h1 @ w1[l] + b1[l], 0.0) @ w2[l] + b2[l]
        h = _layer_norm(h1 + ff, g2[l], be2[l])
    return h


# ----------------------------- parameter init --------------------------------
def init_layer_params(key, E, H):
    ks = jax.random.split(key, 6)
    s = 0.02
    f = jnp.float32
    wq = s * jax.random.normal(ks[0], (E, E), f)
    wk = s * jax.random.normal(ks[1], (E, E), f)
    wv = s * jax.random.normal(ks[2], (E, E), f)
    wo = s * jax.random.normal(ks[3], (E, E), f)
    w1 = s * jax.random.normal(ks[4], (E, H), f)
    w2 = s * jax.random.normal(ks[5], (H, E), f)
    bq = jnp.zeros((E,), f); bk = jnp.zeros((E,), f); bv = jnp.zeros((E,), f)
    bo = jnp.zeros((E,), f); b1 = jnp.zeros((H,), f); b2 = jnp.zeros((E,), f)
    g1 = jnp.ones((E,), f); be1 = jnp.zeros((E,), f)
    g2 = jnp.ones((E,), f); be2 = jnp.zeros((E,), f)
    return (wq, wk, wv, wo, bq, bk, bv, bo,
            w1, b1, w2, b2, g1, be1, g2, be2)


def init_stacked_params(key, num_layers, E, H):
    keys = jax.random.split(key, num_layers)
    per_layer = [init_layer_params(k, E, H) for k in keys]
    n = len(per_layer[0])
    return tuple(jnp.stack([lp[i] for lp in per_layer], axis=0)
                 for i in range(n))


if __name__ == "__main__":
    # small config: embedding_size=32, num_layers=2, num_heads=4,
    # max_len=8, hidden=64, dropout off (inference)
    B, S, E, NUM_HEADS, HIDDEN, NUM_LAYERS = 2, 8, 32, 4, 64, 2

    key = jax.random.PRNGKey(0)
    k_x, k_params = jax.random.split(key, 2)

    x = jax.random.normal(k_x, (B, S, E), jnp.float32)
    lengths = jnp.array([S, 5], dtype=jnp.int32)
    # mask: 1.0 for valid key positions, 0.0 for padding; shape (B, 1, S)
    h_mask = (jnp.arange(S)[None, :] < lengths[:, None]).astype(
        jnp.float32)[:, None, :]

    params = init_stacked_params(k_params, NUM_LAYERS, E, HIDDEN)

    out = encoder_forward(x, h_mask, params, NUM_HEADS)
    jax.block_until_ready(out)
    assert out.shape == (B, S, E)

    ref = encoder_reference(x, h_mask, params, NUM_HEADS)
    err = float(jnp.max(jnp.abs(out - ref)))
    assert err < 5e-2, f"kernel/reference mismatch: max abs err {err}"

    print("KERNEL_OK")
</pallas_src>

<mosaic_0001>
module attributes {stable_mosaic.version = 11 : i64} {
  func.func @encoder_stack_kernel(%arg0: i32, %arg1: i32, %arg2: memref<1x8x32xf32, #tpu.memory_space<vmem>>, %arg3: memref<1x1x8xf32, #tpu.memory_space<vmem>>, %arg4: memref<1x12x32x8xf32, #tpu.memory_space<vmem>>, %arg5: memref<1x12x1x8xf32, #tpu.memory_space<vmem>>, %arg6: memref<1x4x8x32xf32, #tpu.memory_space<vmem>>, %arg7: memref<1x1x32xf32, #tpu.memory_space<vmem>>, %arg8: memref<1x1x32xf32, #tpu.memory_space<vmem>>, %arg9: memref<1x1x32xf32, #tpu.memory_space<vmem>>, %arg10: memref<1x32x64xf32, #tpu.memory_space<vmem>>, %arg11: memref<1x1x64xf32, #tpu.memory_space<vmem>>, %arg12: memref<1x64x32xf32, #tpu.memory_space<vmem>>, %arg13: memref<1x1x32xf32, #tpu.memory_space<vmem>>, %arg14: memref<1x1x32xf32, #tpu.memory_space<vmem>>, %arg15: memref<1x1x32xf32, #tpu.memory_space<vmem>>, %arg16: memref<1x8x32xf32, #tpu.memory_space<vmem>>, %arg17: memref<8x32xf32, #tpu.memory_space<vmem>>) attributes {dimension_semantics = [#tpu.dimension_semantics<parallel>, #tpu.dimension_semantics<arbitrary>], iteration_bounds = array<i64: 2, 2>, scalar_prefetch = 0 : i64, scratch_operands = 1 : i64, tpu.core_type = #tpu.core_type<tc>, window_params = [{transform_indices = @transform_0, window_bounds = array<i64: 1, 8, 32>}, {transform_indices = @transform_1, window_bounds = array<i64: 1, 1, 8>}, {transform_indices = @transform_2, window_bounds = array<i64: 1, 12, 32, 8>}, {transform_indices = @transform_3, window_bounds = array<i64: 1, 12, 1, 8>}, {transform_indices = @transform_4, window_bounds = array<i64: 1, 4, 8, 32>}, {transform_indices = @transform_5, window_bounds = array<i64: 1, 1, 32>}, {transform_indices = @transform_6, window_bounds = array<i64: 1, 1, 32>}, {transform_indices = @transform_7, window_bounds = array<i64: 1, 1, 32>}, {transform_indices = @transform_8, window_bounds = array<i64: 1, 32, 64>}, {transform_indices = @transform_9, window_bounds = array<i64: 1, 1, 64>}, {transform_indices = @transform_10, window_bounds = array<i64: 1, 64, 32>}, {transform_indices = @transform_11, window_bounds = array<i64: 1, 1, 32>}, {transform_indices = @transform_12, window_bounds = array<i64: 1, 1, 32>}, {transform_indices = @transform_13, window_bounds = array<i64: 1, 1, 32>}, {transform_indices = @transform_14, window_bounds = array<i64: 1, 8, 32>}]} {
    %c0_i32 = arith.constant 0 : i32
    %0 = arith.cmpi eq, %arg1, %c0_i32 : i32
    %1 = arith.extui %0 : i1 to i32
    %c0_i32_0 = arith.constant 0 : i32
    %2 = arith.cmpi ne, %1, %c0_i32_0 : i32
    scf.if %2 {
      %c0_66 = arith.constant 0 : index
      %c0_67 = arith.constant 0 : index
      %c0_68 = arith.constant 0 : index
      %113 = vector.load %arg2[%c0_66, %c0_67, %c0_68] : memref<1x8x32xf32, #tpu.memory_space<vmem>>, vector<1x8x32xf32>
      %114 = vector.shape_cast %113 : vector<1x8x32xf32> to vector<8x32xf32>
      %c0_69 = arith.constant 0 : index
      %c0_70 = arith.constant 0 : index
      %115 = vector.load %arg17[%c0_69, %c0_70] : memref<8x32xf32, #tpu.memory_space<vmem>>, vector<8x32xf32>
      tpu.vector_store %arg17[%c0_69, %c0_70], %114 {strides = array<i32>} : memref<8x32xf32, #tpu.memory_space<vmem>>, vector<8x32xf32>,
    } else {
    }
    %c0 = arith.constant 0 : index
    %c0_1 = arith.constant 0 : index
    %3 = vector.load %arg17[%c0, %c0_1] : memref<8x32xf32, #tpu.memory_space<vmem>>, vector<8x32xf32>
    %c0_2 = arith.constant 0 : index
    %c0_3 = arith.constant 0 : index
    %c0_4 = arith.constant 0 : index
    %c0_5 = arith.constant 0 : index
    %4 = vector.load %arg4[%c0_2, %c0_3, %c0_4, %c0_5] : memref<1x12x32x8xf32, #tpu.memory_space<vmem>>, vector<1x12x32x8xf32>
    %5 = vector.shape_cast %4 : vector<1x12x32x8xf32> to vector<12x32x8xf32>
    %6 = vector.shape_cast %3 : vector<8x32xf32> to vector<1x8x32xf32>
    %7 = vector.broadcast %6 : vector<1x8x32xf32> to vector<12x8x32xf32>
    "tpu.trace_start"() <{level = 10 : i32, message = "gse,ged->gsd"}> : () -> ()
    %cst = arith.constant dense<0.000000e+00> : vector<12x8x8xf32>
    %8 = tpu.matmul %7, %5, %cst {dimension_numbers = #tpu.dot_dimension_numbers<[2], [1], [1], [2], [0, 0, 0, 1, 1, 2], [0], [0]>} : vector<12x8x32xf32>, vector<12x32x8xf32>, vector<12x8x8xf32> -> vector<12x8x8xf32>
    "tpu.trace_stop"() : () -> ()
    %c0_6 = arith.constant 0 : index
    %c0_7 = arith.constant 0 : index
    %c0_8 = arith.constant 0 : index
    %c0_9 = arith.constant 0 : index
    %9 = vector.load %arg5[%c0_6, %c0_7, %c0_8, %c0_9] : memref<1x12x1x8xf32, #tpu.memory_space<vmem>>, vector<1x12x1x8xf32>
    %10 = vector.shape_cast %9 : vector<1x12x1x8xf32> to vector<12x1x8xf32>
    %11 = vector.broadcast %10 : vector<12x1x8xf32> to vector<12x8x8xf32>
    %12 = arith.addf %8, %11 : vector<12x8x8xf32>
    %13 = vector.extract_strided_slice %12 {offsets = [0, 0, 0], sizes = [4, 8, 8], strides = [1, 1, 1]} : vector<12x8x8xf32> to vector<4x8x8xf32>
    %14 = vector.extract_strided_slice %12 {offsets = [4, 0, 0], sizes = [4, 8, 8], strides = [1, 1, 1]} : vector<12x8x8xf32> to vector<4x8x8xf32>
    %15 = vector.extract_strided_slice %12 {offsets = [8, 0, 0], sizes = [4, 8, 8], strides = [1, 1, 1]} : vector<12x8x8xf32> to vector<4x8x8xf32>
    "tpu.trace_start"() <{level = 10 : i32, message = "nqd,nkd->nqk"}> : () -> ()
    %cst_10 = arith.constant dense<0.000000e+00> : vector<4x8x8xf32>
    %16 = tpu.matmul %13, %14, %cst_10 {dimension_numbers = #tpu.dot_dimension_numbers<[2], [2], [1], [1], [0, 0, 0, 1, 1, 1], [0], [0]>} : vector<4x8x8xf32>, vector<4x8x8xf32>, vector<4x8x8xf32> -> vector<4x8x8xf32>
    "tpu.trace_stop"() : () -> ()
    %c0_11 = arith.constant 0 : index
    %c0_12 = arith.constant 0 : index
    %c0_13 = arith.constant 0 : index
    %17 = vector.load %arg3[%c0_11, %c0_12, %c0_13] : memref<1x1x8xf32, #tpu.memory_space<vmem>>, vector<1x1x8xf32>
    %18 = vector.broadcast %17 : vector<1x1x8xf32> to vector<4x8x8xf32>
    %19 = arith.addf %16, %18 : vector<4x8x8xf32>
    %cst_14 = arith.constant dense<0xFF800000> : vector<4x8xf32>
    %20 = vector.multi_reduction <maximumf>, %19, %cst_14 [2] : vector<4x8x8xf32> to vector<4x8xf32>
    %21 = vector.shape_cast %20 : vector<4x8xf32> to vector<4x8x1xf32>
    %22 = vector.broadcast %21 : vector<4x8x1xf32> to vector<4x8x8xf32>
    %23 = arith.subf %19, %22 : vector<4x8x8xf32>
    %24 = math.exp %23 : vector<4x8x8xf32>
    %cst_15 = arith.constant dense<0.000000e+00> : vector<4x8xf32>
    %25 = vector.multi_reduction <add>, %24, %cst_15 [2] : vector<4x8x8xf32> to vector<4x8xf32>
    %26 = vector.shape_cast %25 : vector<4x8xf32> to vector<4x8x1xf32>
    %27 = tpu.reciprocal %26 {approx = true} : vector<4x8x1xf32> -> vector<4x8x1xf32>
    %28 = vector.broadcast %27 : vector<4x8x1xf32> to vector<4x8x8xf32>
    %29 = arith.mulf %24, %28 : vector<4x8x8xf32>
    "tpu.trace_start"() <{level = 10 : i32, message = "nqk,nkd->nqd"}> : () -> ()
    %cst_16 = arith.constant dense<0.000000e+00> : vector<4x8x8xf32>
    %30 = tpu.matmul %29, %15, %cst_16 {dimension_numbers = #tpu.dot_dimension_numbers<[2], [1], [1], [2], [0, 0, 0, 1, 1, 2], [0], [0]>} : vector<4x8x8xf32>, vector<4x8x8xf32>, vector<4x8x8xf32> -> vector<4x8x8xf32>
    "tpu.trace_stop"() : () -> ()
    %c0_17 = arith.constant 0 : index
    %c0_18 = arith.constant 0 : index
    %c0_19 = arith.constant 0 : index
    %c0_20 = arith.constant 0 : index
    %31 = vector.load %arg6[%c0_17, %c0_18, %c0_19, %c0_20] : memref<1x4x8x32xf32, #tpu.memory_space<vmem>>, vector<1x4x8x32xf32>
    %32 = vector.shape_cast %31 : vector<1x4x8x32xf32> to vector<4x8x32xf32>
    "tpu.trace_start"() <{level = 10 : i32, message = "nsd,nde->nse"}> : () -> ()
    %cst_21 = arith.constant dense<0.000000e+00> : vector<4x8x32xf32>
    %33 = tpu.matmul %30, %32, %cst_21 {dimension_numbers = #tpu.dot_dimension_numbers<[2], [1], [1], [2], [0, 0, 0, 1, 1, 2], [0], [0]>} : vector<4x8x8xf32>, vector<4x8x32xf32>, vector<4x8x32xf32> -> vector<4x8x32xf32>
    "tpu.trace_stop"() : () -> ()
    %cst_22 = arith.constant dense<0.000000e+00> : vector<8x32xf32>
    %34 = vector.multi_reduction <add>, %33, %cst_22 [0] : vector<4x8x32xf32> to vector<8x32xf32>
    %c0_23 = arith.constant 0 : index
    %c0_24 = arith.constant 0 : index
    %c0_25 = arith.constant 0 : index
    %35 = vector.load %arg7[%c0_23, %c0_24, %c0_25] : memref<1x1x32xf32, #tpu.memory_space<vmem>>, vector<1x1x32xf32>
    %36 = vector.shape_cast %35 : vector<1x1x32xf32> to vector<1x32xf32>
    %37 = vector.broadcast %36 : vector<1x32xf32> to vector<8x32xf32>
    %38 = arith.addf %34, %37 : vector<8x32xf32>
    %39 = arith.addf %3, %38 : vector<8x32xf32>
    %c0_26 = arith.constant 0 : index
    %c0_27 = arith.constant 0 : index
    %c0_28 = arith.constant 0 : index
    %40 = vector.load %arg8[%c0_26, %c0_27, %c0_28] : memref<1x1x32xf32, #tpu.memory_space<vmem>>, vector<1x1x32xf32>
    %41 = vector.shape_cast %40 : vector<1x1x32xf32> to vector<1x32xf32>
    %c0_29 = arith.constant 0 : index
    %c0_30 = arith.constant 0 : index
    %c0_31 = arith.constant 0 : index
    %42 = vector.load %arg9[%c0_29, %c0_30, %c0_31] : memref<1x1x32xf32, #tpu.memory_space<vmem>>, vector<1x1x32xf32>
    %43 = vector.shape_cast %42 : vector<1x1x32xf32> to vector<1x32xf32>
    %cst_32 = arith.constant dense<0.000000e+00> : vector<8xf32>
    %44 = vector.multi_reduction <add>, %39, %cst_32 [1] : vector<8x32xf32> to vector<8xf32>
    %45 = vector.shape_cast %44 : vector<8xf32> to vector<8x1xf32>
    %cst_33 = arith.constant 3.200000e+01 : f32
    %46 = vector.broadcast %cst_33 : f32 to vector<8x1xf32>
    %47 = arith.divf %45, %46 : vector<8x1xf32>
    %48 = vector.broadcast %47 : vector<8x1xf32> to vector<8x32xf32>
    %49 = arith.subf %39, %48 : vector<8x32xf32>
    %50 = arith.mulf %49, %49 : vector<8x32xf32>
    %cst_34 = arith.constant dense<0.000000e+00> : vector<8xf32>
    %51 = vector.multi_reduction <add>, %50, %cst_34 [1] : vector<8x32xf32> to vector<8xf32>
    %52 = vector.shape_cast %51 : vector<8xf32> to vector<8x1xf32>
    %cst_35 = arith.constant 3.200000e+01 : f32
    %53 = vector.broadcast %cst_35 : f32 to vector<8x1xf32>
    %54 = arith.divf %52, %53 : vector<8x1xf32>
    %55 = vector.broadcast %47 : vector<8x1xf32> to vector<8x32xf32>
    %56 = arith.subf %39, %55 : vector<8x32xf32>
    %cst_36 = arith.constant 9.99999974E-6 : f32
    %57 = vector.broadcast %cst_36 : f32 to vector<8x1xf32>
    %58 = arith.addf %54, %57 : vector<8x1xf32>
    %59 = math.rsqrt %58 : vector<8x1xf32>
    %60 = vector.broadcast %59 : vector<8x1xf32> to vector<8x32xf32>
    %61 = arith.mulf %56, %60 : vector<8x32xf32>
    %62 = vector.broadcast %41 : vector<1x32xf32> to vector<8x32xf32>
    %63 = arith.mulf %61, %62 : vector<8x32xf32>
    %64 = vector.broadcast %43 : vector<1x32xf32> to vector<8x32xf32>
    %65 = arith.addf %63, %64 : vector<8x32xf32>
    %c0_37 = arith.constant 0 : index
    %c0_38 = arith.constant 0 : index
    %c0_39 = arith.constant 0 : index
    %66 = vector.load %arg10[%c0_37, %c0_38, %c0_39] : memref<1x32x64xf32, #tpu.memory_space<vmem>>, vector<1x32x64xf32>
    %67 = vector.shape_cast %66 : vector<1x32x64xf32> to vector<32x64xf32>
    %c0_40 = arith.constant 0 : index
    %c0_41 = arith.constant 0 : index
    %c0_42 = arith.constant 0 : index
    %68 = vector.load %arg12[%c0_40, %c0_41, %c0_42] : memref<1x64x32xf32, #tpu.memory_space<vmem>>, vector<1x64x32xf32>
    %69 = vector.shape_cast %68 : vector<1x64x32xf32> to vector<64x32xf32>
    %cst_43 = arith.constant dense<0.000000e+00> : vector<8x64xf32>
    %70 = tpu.matmul %65, %67, %cst_43 {dimension_numbers = #tpu.dot_dimension_numbers<[1], [0], [0], [1], [0, 0, 1, 1], [], []>} : vector<8x32xf32>, vector<32x64xf32>, vector<8x64xf32> -> vector<8x64xf32>
    %c0_44 = arith.constant 0 : index
    %c0_45 = arith.constant 0 : index
    %c0_46 = arith.constant 0 : index
    %71 = vector.load %arg11[%c0_44, %c0_45, %c0_46] : memref<1x1x64xf32, #tpu.memory_space<vmem>>, vector<1x1x64xf32>
    %72 = vector.shape_cast %71 : vector<1x1x64xf32> to vector<1x64xf32>
    %73 = vector.broadcast %72 : vector<1x64xf32> to vector<8x64xf32>
    %74 = arith.addf %70, %73 : vector<8x64xf32>
    %cst_47 = arith.constant 0.000000e+00 : f32
    %75 = vector.broadcast %cst_47 : f32 to vector<8x64xf32>
    %76 = arith.maximumf %74, %75 : vector<8x64xf32>
    %cst_48 = arith.constant dense<0.000000e+00> : vector<8x32xf32>
    %77 = tpu.matmul %76, %69, %cst_48 {dimension_numbers = #tpu.dot_dimension_numbers<[1], [0], [0], [1], [0, 0, 1, 1], [], []>} : vector<8x64xf32>, vector<64x32xf32>, vector<8x32xf32> -> vector<8x32xf32>
    %c0_49 = arith.constant 0 : index
    %c0_50 = arith.constant 0 : index
    %c0_51 = arith.constant 0 : index
    %78 = vector.load %arg13[%c0_49, %c0_50, %c0_51] : memref<1x1x32xf32, #tpu.memory_space<vmem>>, vector<1x1x32xf32>
    %79 = vector.shape_cast %78 : vector<1x1x32xf32> to vector<1x32xf32>
    %80 = vector.broadcast %79 : vector<1x32xf32> to vector<8x32xf32>
    %81 = arith.addf %77, %80 : vector<8x32xf32>
    %82 = arith.addf %65, %81 : vector<8x32xf32>
    %c0_52 = arith.constant 0 : index
    %c0_53 = arith.constant 0 : index
    %c0_54 = arith.constant 0 : index
    %83 = vector.load %arg14[%c0_52, %c0_53, %c0_54] : memref<1x1x32xf32, #tpu.memory_space<vmem>>, vector<1x1x32xf32>
    %84 = vector.shape_cast %83 : vector<1x1x32xf32> to vector<1x32xf32>
    %c0_55 = arith.constant 0 : index
    %c0_56 = arith.constant 0 : index
    %c0_57 = arith.constant 0 : index
    %85 = vector.load %arg15[%c0_55, %c0_56, %c0_57] : memref<1x1x32xf32, #tpu.memory_space<vmem>>, vector<1x1x32xf32>
    %86 = vector.shape_cast %85 : vector<1x1x32xf32> to vector<1x32xf32>
    %cst_58 = arith.constant dense<0.000000e+00> : vector<8xf32>
    %87 = vector.multi_reduction <add>, %82, %cst_58 [1] : vector<8x32xf32> to vector<8xf32>
    %88 = vector.shape_cast %87 : vector<8xf32> to vector<8x1xf32>
    %cst_59 = arith.constant 3.200000e+01 : f32
    %89 = vector.broadcast %cst_59 : f32 to vector<8x1xf32>
    %90 = arith.divf %88, %89 : vector<8x1xf32>
    %91 = vector.broadcast %90 : vector<8x1xf32> to vector<8x32xf32>
    %92 = arith.subf %82, %91 : vector<8x32xf32>
    %93 = arith.mulf %92, %92 : vector<8x32xf32>
    %cst_60 = arith.constant dense<0.000000e+00> : vector<8xf32>
    %94 = vector.multi_reduction <add>, %93, %cst_60 [1] : vector<8x32xf32> to vector<8xf32>
    %95 = vector.shape_cast %94 : vector<8xf32> to vector<8x1xf32>
    %cst_61 = arith.constant 3.200000e+01 : f32
    %96 = vector.broadcast %cst_61 : f32 to vector<8x1xf32>
    %97 = arith.divf %95, %96 : vector<8x1xf32>
    %98 = vector.broadcast %90 : vector<8x1xf32> to vector<8x32xf32>
    %99 = arith.subf %82, %98 : vector<8x32xf32>
    %cst_62 = arith.constant 9.99999974E-6 : f32
    %100 = vector.broadcast %cst_62 : f32 to vector<8x1xf32>
    %101 = arith.addf %97, %100 : vector<8x1xf32>
    %102 = math.rsqrt %101 : vector<8x1xf32>
    %103 = vector.broadcast %102 : vector<8x1xf32> to vector<8x32xf32>
    %104 = arith.mulf %99, %103 : vector<8x32xf32>
    %105 = vector.broadcast %84 : vector<1x32xf32> to vector<8x32xf32>
    %106 = arith.mulf %104, %105 : vector<8x32xf32>
    %107 = vector.broadcast %86 : vector<1x32xf32> to vector<8x32xf32>
    %108 = arith.addf %106, %107 : vector<8x32xf32>
    %c0_63 = arith.constant 0 : index
    %c0_64 = arith.constant 0 : index
    %109 = vector.load %arg17[%c0_63, %c0_64] : memref<8x32xf32, #tpu.memory_space<vmem>>, vector<8x32xf32>
    tpu.vector_store %arg17[%c0_63, %c0_64], %108 {strides = array<i32>} : memref<8x32xf32, #tpu.memory_space<vmem>>, vector<8x32xf32>,
    %c1_i32 = arith.constant 1 : i32
    %110 = arith.cmpi eq, %arg1, %c1_i32 : i32
    %111 = arith.extui %110 : i1 to i32
    %c0_i32_65 = arith.constant 0 : i32
    %112 = arith.cmpi ne, %111, %c0_i32_65 : i32
    scf.if %112 {
      %c0_66 = arith.constant 0 : index
      %c0_67 = arith.constant 0 : index
      %c0_68 = arith.constant 0 : index
      %113 = vector.load %arg16[%c0_66, %c0_67, %c0_68] : memref<1x8x32xf32, #tpu.memory_space<vmem>>, vector<1x8x32xf32>
      %114 = vector.shape_cast %113 : vector<1x8x32xf32> to vector<8x32xf32>
      %115 = vector.shape_cast %108 : vector<8x32xf32> to vector<1x8x32xf32>
      tpu.vector_store %arg16[%c0_66, %c0_67, %c0_68], %115 {strides = array<i32>} : memref<1x8x32xf32, #tpu.memory_space<vmem>>, vector<1x8x32xf32>,
    } else {
    }
    return
  }
  func.func @transform_0(%arg0: i32, %arg1: i32) -> (i32, i32, i32) {
    %c0_i32 = arith.constant 0 : i32
    %c0_i32_0 = arith.constant 0 : i32
    %c0_i32_1 = arith.constant 0 : i32
    return %arg0, %c0_i32, %c0_i32_0 : i32, i32, i32
  }
  func.func @transform_1(%arg0: i32, %arg1: i32) -> (i32, i32, i32) {
    %c0_i32 = arith.constant 0 : i32
    %c0_i32_0 = arith.constant 0 : i32
    %c0_i32_1 = arith.constant 0 : i32
    return %arg0, %c0_i32, %c0_i32_0 : i32, i32, i32
  }
  func.func @transform_2(%arg0: i32, %arg1: i32) -> (i32, i32, i32, i32) {
    %c0_i32 = arith.constant 0 : i32
    %c0_i32_0 = arith.constant 0 : i32
    %c0_i32_1 = arith.constant 0 : i32
    %c0_i32_2 = arith.constant 0 : i32
    return %arg1, %c0_i32, %c0_i32_0, %c0_i32_1 : i32, i32, i32, i32
  }
  func.func @transform_3(%arg0: i32, %arg1: i32) -> (i32, i32, i32, i32) {
    %c0_i32 = arith.constant 0 : i32
    %c0_i32_0 = arith.constant 0 : i32
    %c0_i32_1 = arith.constant 0 : i32
    %c0_i32_2 = arith.constant 0 : i32
    return %arg1, %c0_i32, %c0_i32_0, %c0_i32_1 : i32, i32, i32, i32
  }
  func.func @transform_4(%arg0: i32, %arg1: i32) -> (i32, i32, i32, i32) {
    %c0_i32 = arith.constant 0 : i32
    %c0_i32_0 = arith.constant 0 : i32
    %c0_i32_1 = arith.constant 0 : i32
    %c0_i32_2 = arith.constant 0 : i32
    return %arg1, %c0_i32, %c0_i32_0, %c0_i32_1 : i32, i32, i32, i32
  }
  func.func @transform_5(%arg0: i32, %arg1: i32) -> (i32, i32, i32) {
    %c0_i32 = arith.constant 0 : i32
    %c0_i32_0 = arith.constant 0 : i32
    %c0_i32_1 = arith.constant 0 : i32
    return %arg1, %c0_i32, %c0_i32_0 : i32, i32, i32
  }
  func.func @transform_6(%arg0: i32, %arg1: i32) -> (i32, i32, i32) {
    %c0_i32 = arith.constant 0 : i32
    %c0_i32_0 = arith.constant 0 : i32
    %c0_i32_1 = arith.constant 0 : i32
    return %arg1, %c0_i32, %c0_i32_0 : i32, i32, i32
  }
  func.func @transform_7(%arg0: i32, %arg1: i32) -> (i32, i32, i32) {
    %c0_i32 = arith.constant 0 : i32
    %c0_i32_0 = arith.constant 0 : i32
    %c0_i32_1 = arith.constant 0 : i32
    return %arg1, %c0_i32, %c0_i32_0 : i32, i32, i32
  }
  func.func @transform_8(%arg0: i32, %arg1: i32) -> (i32, i32, i32) {
    %c0_i32 = arith.constant 0 : i32
    %c0_i32_0 = arith.constant 0 : i32
    %c0_i32_1 = arith.constant 0 : i32
    return %arg1, %c0_i32, %c0_i32_0 : i32, i32, i32
  }
  func.func @transform_9(%arg0: i32, %arg1: i32) -> (i32, i32, i32) {
    %c0_i32 = arith.constant 0 : i32
    %c0_i32_0 = arith.constant 0 : i32
    %c0_i32_1 = arith.constant 0 : i32
    return %arg1, %c0_i32, %c0_i32_0 : i32, i32, i32
  }
  func.func @transform_10(%arg0: i32, %arg1: i32) -> (i32, i32, i32) {
    %c0_i32 = arith.constant 0 : i32
    %c0_i32_0 = arith.constant 0 : i32
    %c0_i32_1 = arith.constant 0 : i32
    return %arg1, %c0_i32, %c0_i32_0 : i32, i32, i32
  }
  func.func @transform_11(%arg0: i32, %arg1: i32) -> (i32, i32, i32) {
    %c0_i32 = arith.constant 0 : i32
    %c0_i32_0 = arith.constant 0 : i32
    %c0_i32_1 = arith.constant 0 : i32
    return %arg1, %c0_i32, %c0_i32_0 : i32, i32, i32
  }
  func.func @transform_12(%arg0: i32, %arg1: i32) -> (i32, i32, i32) {
    %c0_i32 = arith.constant 0 : i32
    %c0_i32_0 = arith.constant 0 : i32
    %c0_i32_1 = arith.constant 0 : i32
    return %arg1, %c0_i32, %c0_i32_0 : i32, i32, i32
  }
  func.func @transform_13(%arg0: i32, %arg1: i32) -> (i32, i32, i32) {
    %c0_i32 = arith.constant 0 : i32
    %c0_i32_0 = arith.constant 0 : i32
    %c0_i32_1 = arith.constant 0 : i32
    return %arg1, %c0_i32, %c0_i32_0 : i32, i32, i32
  }
  func.func @transform_14(%arg0: i32, %arg1: i32) -> (i32, i32, i32) {
    %c0_i32 = arith.constant 0 : i32
    %c0_i32_0 = arith.constant 0 : i32
    %c0_i32_1 = arith.constant 0 : i32
    return %arg0, %c0_i32, %c0_i32_0 : i32, i32, i32
  }
}

</mosaic_0001>

<bundles_post_ra>
// kernel: tpu_custom_call.1
= control target key start
LH: loop header
LB: loop body
LE: loop exit
PB: predicated region body
PF: predicated region fallthrough
CT: control target
= control target key end

     0   :  { %s4323_s0 = inlined_call_operand.vmem [shape: f32[2,8,32], index: 0, kind: input, shape index: {}]   ;;  %s4324_s1 = inlined_call_operand.vmem [shape: f32[2,1,8], index: 1, kind: input, shape index: {}]   ;;  %s4325_s2 = inlined_call_operand.vmem [shape: f32[2,12,32,8], index: 2, kind: input, shape index: {}]   ;;  %s4326_s3 = inlined_call_operand.vmem [shape: f32[2,12,1,8], index: 3, kind: input, shape index: {}]   ;;  %s4327_s4 = inlined_call_operand.vmem [shape: f32[2,4,8,32], index: 4, kind: input, shape index: {}]   ;;  %s4328_s5 = inlined_call_operand.vmem [shape: f32[2,1,32], index: 5, kind: input, shape index: {}]   ;;  %s4329_s6 = inlined_call_operand.vmem [shape: f32[2,1,32], index: 6, kind: input, shape index: {}]   ;;  %s4330_s7 = inlined_call_operand.vmem [shape: f32[2,1,32], index: 7, kind: input, shape index: {}]   ;;  %s4331_s8 = inlined_call_operand.vmem [shape: f32[2,32,64], index: 8, kind: input, shape index: {}]   ;;  %s4332_s9 = inlined_call_operand.vmem [shape: f32[2,1,64], index: 9, kind: input, shape index: {}]   ;;  %s4333_s10 = inlined_call_operand.vmem [shape: f32[2,64,32], index: 10, kind: input, shape index: {}]   ;;  %s4334_s11 = inlined_call_operand.vmem [shape: f32[2,1,32], index: 11, kind: input, shape index: {}]   ;;  %s4335_s12 = inlined_call_operand.vmem [shape: f32[2,1,32], index: 12, kind: input, shape index: {}]   ;;  %s4336_s13 = inlined_call_operand.vmem [shape: f32[2,1,32], index: 13, kind: input, shape index: {}]   ;;  %s4337_s14 = inlined_call_operand.hbm [shape: f32[2,8,32], index: 14, kind: output, shape index: {}]  }
   0x1   :  { %4354 = sst [smem:[#allocation20_spill]] %s4323_s0 }
   0x2   :  { %4355 = sst [smem:[#allocation21_spill]] %s4324_s1 }
   0x3   :  { %4356 = sst [smem:[#allocation22_spill]] %s4325_s2 }
   0x4   :  { %4357 = sst [smem:[#allocation23_spill]] %s4326_s3 }
   0x5   :  { %4358 = sst [smem:[#allocation24_spill]] %s4327_s4 }
   0x6   :  { %4359 = sst [smem:[#allocation25_spill]] %s4331_s8 }
   0x7   :  { %4360 = sst [smem:[#allocation26_spill]] %s4336_s13 }
   0x8   :  { %4361 = sst [smem:[#allocation27_spill]] %s4337_s14 }
   0x9   :  { %19 = vsyncpa [#allocation4], 0 }
   0xa   :  { %21 = vsyncpa [#allocation4 + $0x1], 0  ;;  %s3838_s29 = smov 0   ;;  %s3840_s30 = smov 0  }
   0xb   :  { %s3842_s15 = smov 0   ;;  %s3844_s16 = smov 0  }
   0xc   :  { %s3846_s17 = smov 0   ;;  %s3848_s18 = smov 0  }
   0xd   :  { %s3850_s19 = smov 0   ;;  %s3852_s20 = smov 0  }
   0xe LB: > { %4362 = sst [smem:[#allocation6_spill]] %s3729_s29  ;;  %s3084_s21 = sadd.s32 4294967295, %s3757_s20   ;;  %s3757_s20 = sphi %s3852_s20, %s27_s20   ;;  %s3753_s19 = sphi %s3850_s19, %s4408_s19   ;;  %s3749_s18 = sphi %s3848_s18, %s4407_s18   ;;  %s3745_s17 = sphi %s3846_s17, %s4406_s17   ;;  %s3741_s16 = sphi %s3844_s16, %s4405_s16   ;;  %s3737_s15 = sphi %s3842_s15, %s4404_s15   ;;  %s3733_s30 = sphi %s3840_s30, %s4403_s30   ;;  %s3729_s29 = sphi %s3838_s29, %s4402_s29  }
   0xf   : > { %4363 = sst [smem:[#allocation7_spill]] %s3733_s30  ;;  %s3085_s22 = sadd.s32 4294967294, %s3757_s20  }
  0x10   : > { %4364 = sst [smem:[#allocation8_spill]] %s3737_s15  ;;  %s36_s23 = sadd.s32 1, %s3749_s18 }
  0x11   : > { %4365 = sst [smem:[#allocation9_spill]] %s3741_s16  ;;  %p37_p0 = scmp.ge.s32.totalorder %s36_s23, 2 }
  0x12   : > { %4366 = sst [smem:[#allocation10_spill]] %s3745_s17  ;;  %s39_s24 = sadd.s32 1, %s3753_s19 }
  0x13   : > { %4367 = sst [smem:[#allocation11_spill]] %s3749_s18  ;;  %p420_p1 = scmp.ne.s32.totalorder %s3737_s15, %s3733_s30 }
  0x14   : > { %4368 = sst [smem:[#allocation12_spill]] %s3753_s19  ;;  %p421_p2 = scmp.eq.s32.totalorder %s3084_s21, 3 }
  0x15   : > { %4369 = sst [smem:[#allocation13_spill]] %s3757_s20  ;;  %s4410_s23 = smov (%p37_p0, %s36_s23), 0 }
  0x16   : > { %4370 = sst [smem:[#allocation14_spill]] %s4410_s23  ;;  %s4412_s24 = smov (!%p37_p0, %s39_s24), %s3753_s19 }
  0x17   : > { %p3887_p3 = por %p421_p2, %p420_p1  ;;  %p426_p4 = scmp.ne.s32.totalorder %s3733_s30, %s3729_s29 }
  0x18   : > { %p41_p5 = scmp.ge.s32.totalorder %s4412_s24, 2  ;;  %p427_p6 = scmp.eq.s32.totalorder %s3085_s22, 3 }
  0x19   : > { %s4371_s25 = scalar_select %p3887_p3, 1, 0 }
  0x1a   : > { %p3088_p7 = scmp.ge.s32.totalorder %s3757_s20, 1  ;;  %p539_p8 = scmp.lt.s32.totalorder %s3757_s20, 5 }
  0x1b   : > { %4372 = sst [smem:[#allocation15_spill]] %s4371_s25  ;;  %s4414_s24 = smov (%p41_p5, %s4412_s24), 0 }
  0x1c   : > { %4373 = sst [smem:[#allocation16_spill]] %s4414_s24  ;;  %p3897_p9 = por %p427_p6, %p426_p4 }
  0x1d   : > { %p540_p10 = pnand %p3088_p7, %p539_p8  ;;  %s407_s27 = ssub.s32 %s3753_s19, %s4414_s24 }
  0x1e   : > { %s4374_s26 = scalar_select %p3897_p9, 1, 0 }
  0x1f   : > { %s410_s28 = sadd.s32 1, %s3737_s15  ;;  %p408_p11 = scmp.eq.s32.totalorder %s407_s27, 0 }
  0x20   : > { %4375 = sst [smem:[#allocation17_spill]] %s4374_s26  ;;  %543 = sbr.rel (%p540_p10) target bundleno = 2368 (0x940), region = 76 }
  0x21   : > { %s3905_s21 = scalar_select %p408_p11, %s3737_s15, %s410_s28  }
  0x23   : > { %4376 = sst [smem:[#allocation18_spill]] %s3905_s21 }
  0x27   : > { %s4340_s22 = sand.u32 1, %s3733_s30   ;;  %p632_p12 = scmp.lt.s32.totalorder %s3745_s17, 1 }
  0x28   : > { %s3911_s23 = sshll.u32 %s4340_s22, 3  ;;  %p639_p13 = scmp.lt.s32.totalorder %s3741_s16, 1 }
  0x29   : > { %s3915_s18 = scalar_select %p632_p12, %s3745_s17, 1 }
  0x2a   : > { %s3918_s27 = scalar_select %p639_p13, %s3741_s16, 1 }
  0x2b   : > { %4377 = sst [smem:[#allocation19_spill]] %s3915_s18  ;;  %s3090_s28 = sshll.u32 %s3915_s18, 3 }
  0x2c   : > { %s4379_s0 = sld [smem:[#allocation20_spill]]  ;;  %s3567_s29 = smul.u32 384, %s3918_s27 }
  0x2d   : > { %s3568_s20 = smul.u32 12, %s3918_s27  ;;  %s3154_s14 = sshll.u32 %s3918_s27, 5 }
  0x2e   : > { %s4380_s2 = sld [smem:[#allocation22_spill]]  ;;  %s4381_s4 = sld [smem:[#allocation24_spill]] }
  0x2f   : > { %s4382_s3 = sld [smem:[#allocation23_spill]]  ;;  %s4383_s8 = sld [smem:[#allocation25_spill]] }
  0x30   : > { %s669_s22 = scalar_lea.vmem %s4332_s9, %s3918_s27  ;;  %s680_s13 = scalar_lea.vmem %s4335_s12, %s3918_s27 }
  0x31   : > { %s631_s19 = scalar_lea.vmem [#allocation3], %s3911_s23 }
  0x32   : > { %s635_s26 = scalar_lea.vmem %s4379_s0, %s3090_s28  ;;  %s677_s0 = scalar_lea.vmem %s4334_s11, %s3918_s27 }
  0x34   : > { %s3934_s17 = scalar_lea.vmem %s4380_s2, %s3567_s29  ;;  %s3939_s24 = scalar_lea.vmem %s4381_s4, %s3154_s14 }
  0x35   : > { %s3944_s15 = scalar_lea.vmem %s4382_s3, %s3568_s20  ;;  %s3961_s4 = scalar_lea.vmem %s4383_s8, %s3154_s14 }
  0x36   : > { %s3156_s3 = sshll.u32 %s3918_s27, 6  ;;  %s4384_s2 = sld [smem:[#allocation26_spill]] }
  0x37   : > { %s3975_s30 = scalar_lea.vmem %s4333_s10, %s3156_s3  ;;  %s4385_s20 = sld [smem:[#allocation9_spill]] }
  0x3c   : > { %s683_s8 = scalar_lea.vmem %s4384_s2, %s3918_s27 }
  0x3d   : > { %p3098_p0 = scmp.ne.s32.totalorder %s4385_s20, 0 }
  0x3e   : > { %v688_v0 = vld [vmem:[%s635_s26] sm:$0xff] (!%p3098_p0)  ;;  %vm689_vm0 = vcmask (!%p3098_p0), 261120  }
  0x3f   : > { %687 = sbr.rel (%p3098_p0) target bundleno = 70 (0x46), region = 80  ;;  %690 = vst.msk [vmem:[#allocation2] sm:$0xff] (!%p3098_p0), %vm689_vm0, %v688_v0 }
  0x46 PF: > { %v692_v1 = vld [vmem:[%s3934_s17] sm:$0xff]  ;;  %v693_v2 = vld [vmem:[%s3934_s17 + $0x8] sm:$0xff]  ;;  %v3759_v4 = vmov 0.0|0.0   ;;  %v694_v7 = vld [vmem:[%s3934_s17 + $0x10] sm:$0xff]  ;;  %vm3760_vm1 = vmmov 0   ;;  %v3761_v12 = vmov 0.0   ;;  %s4389_s28 = scalar_lea.vmem %s4328_s5, %s3918_s27  ;;  %s4390_s18 = scalar_lea.vmem %s4329_s6, %s3918_s27 }
  0x47   : > { %v696_v3 = vld [vmem:[%s3934_s17 + $0x20] sm:$0xff]  ;;  %3477 = vmatprep.subr.bf16.mxu0 %v3759_v4  ;;  %3483 = vmatprep.subr.bf16.mxu1 %v3759_v4  ;;  %v3478_v5 = vpack.c.bf16 %v693_v2, %v692_v1  ;;  %v697_v6 = vld [vmem:[%s3934_s17 + $0x28] sm:$0xff]  ;;  %v695_v8 = vld [vmem:[%s3934_s17 + $0x18] sm:$0xff]  ;;  %vm824_vm2 = vcmask 261120   ;;  %vm1675_vm3 = vcmask 64512   ;;  %s4386_s2 = sld [smem:[#allocation19_spill]]  ;;  %s4391_s14 = scalar_lea.vmem %s4330_s7, %s3918_s27 }
  0x48   : > { %v3484_v9 = vpack.c.bf16 %v697_v6, %v696_v3  ;;  %v698_v10 = vld [vmem:[%s3934_s17 + $0x30] sm:$0xff]  ;;  %v699_v11 = vld [vmem:[%s3934_s17 + $0x38] sm:$0xff]  ;;  %3263 = vmatprep.mubr.msk.f32.mxu0 %vm3760_vm1, %v3761_v12  ;;  %3274 = vmatprep.mubr.msk.f32.mxu1 %vm3760_vm1, %v3761_v12  ;;  %v3481_v13 = vpack.c.bf16 %v695_v8, %v694_v7  ;;  %v700_v15 = vld [vmem:[%s3934_s17 + $0x40] sm:$0xff]  ;;  %s4387_s26 = sld [smem:[#allocation21_spill]]  ;;  %vm2758_vm4 = vcmask 523264  }
  0x49   : > { %3479 = vmatpush3.bf16.msra.mxu0 %v3478_v5  ;;  %v3487_v14 = vpack.c.bf16 %v699_v11, %v698_v10  ;;  %v701_v16 = vld [vmem:[%s3934_s17 + $0x48] sm:$0xff]  ;;  %v704_v17 = vld [vmem:[%s3934_s17 + $0x60] sm:$0xff]  ;;  %v702_v22 = vld [vmem:[%s3934_s17 + $0x50] sm:$0xff] }
  0x4a   : > { %3485 = vmatpush3.bf16.msra.mxu1 %v3484_v9  ;;  %3480 = vmatprep.subr.bf16.mxu0 %v3759_v4  ;;  %v705_v18 = vld [vmem:[%s3934_s17 + $0x68] sm:$0xff]  ;;  %v4007_v19 = vld [vmem:[#allocation2] sm:$0xff]  ;;  %v3490_v20 = vpack.c.bf16 %v701_v16, %v700_v15  ;;  %v703_v23 = vld [vmem:[%s3934_s17 + $0x58] sm:$0xff] }
  0x4b   : > { %3486 = vmatprep.subr.bf16.mxu1 %v3759_v4  ;;  %v3496_v21 = vpack.c.bf16 %v705_v18, %v704_v17  ;;  %v706_v24 = vld [vmem:[%s3934_s17 + $0x70] sm:$0xff]  ;;  %v707_v25 = vld [vmem:[%s3934_s17 + $0x78] sm:$0xff]  ;;  %v3493_v26 = vpack.c.bf16 %v703_v23, %v702_v22  ;;  %v708_v28 = vld [vmem:[%s3934_s17 + $0x80] sm:$0xff] }
  0x4c   : > { %v3499_v27 = vpack.c.bf16 %v707_v25, %v706_v24  ;;  %v709_v29 = vld [vmem:[%s3934_s17 + $0x88] sm:$0xff]  ;;  %v712_v30 = vld [vmem:[%s3934_s17 + $0xa0] sm:$0xff]  ;;  %v710_v34 = vld [vmem:[%s3934_s17 + $0x90] sm:$0xff] }
  0x4d   : > { %3482 = vmatpush3.bf16.msra.mxu0 %v3481_v13  ;;  %v713_v31 = vld [vmem:[%s3934_s17 + $0xa8] sm:$0xff]  ;;  %v3502_v32 = vpack.c.bf16 %v709_v29, %v708_v28  ;;  %v711_v35 = vld [vmem:[%s3934_s17 + $0x98] sm:$0xff]  ;;  %v714_v36 = vld [vmem:[%s3934_s17 + $0xb0] sm:$0xff] }
  0x4e   : > { %3488 = vmatpush3.bf16.msra.mxu1 %v3487_v14  ;;  %3489 = vmatprep.subr.bf16.mxu0 %v3759_v4  ;;  %v3508_v33 = vpack.c.bf16 %v713_v31, %v712_v30  ;;  %v715_v37 = vld [vmem:[%s3934_s17 + $0xb8] sm:$0xff]  ;;  %v3505_v38 = vpack.c.bf16 %v711_v35, %v710_v34  ;;  %v716_v40 = vld [vmem:[%s3934_s17 + $0xc0] sm:$0xff]  ;;  %v717_v41 = vld [vmem:[%s3934_s17 + $0xc8] sm:$0xff]  ;;  %s4388_s21 = scalar_lea.vmem %s4387_s26, %s4386_s2 }
  0x4f   : > { %3495 = vmatprep.subr.bf16.mxu1 %v3759_v4  ;;  %v3511_v39 = vpack.c.bf16 %v715_v37, %v714_v36  ;;  %v720_v42 = vld [vmem:[%s3934_s17 + $0xe0] sm:$0xff]  ;;  %v721_v43 = vld [vmem:[%s3934_s17 + $0xe8] sm:$0xff]  ;;  %v3514_v44 = vpack.c.bf16 %v717_v41, %v716_v40  ;;  %v718_v46 = vld [vmem:[%s3934_s17 + $0xd0] sm:$0xff] }
  0x50   : > { %3264 = vmatmul.mubr.msk.f32.vlgmr.msra.gmra.mrb[0].mxu0 %vm824_vm2, %v4007_v19  ;;  %v3520_v45 = vpack.c.bf16 %v721_v43, %v720_v42  ;;  %v719_v47 = vld [vmem:[%s3934_s17 + $0xd8] sm:$0xff]  ;;  %v722_v48 = vld [vmem:[%s3934_s17 + $0xf0] sm:$0xff]  ;;  %v724_v52 = vld [vmem:[%s3934_s17 + $0x100] sm:$0xff] }
  0x51   : > { %3275 = vmatmul.mubr.msk.f32.vlgmr.msra.gmra.mrb[0].mxu1 %vm824_vm2, %v4007_v19  ;;  %3491 = vmatpush3.bf16.msra.mxu0 %v3490_v20  ;;  %v723_v49 = vld [vmem:[%s3934_s17 + $0xf8] sm:$0xff]  ;;  %v3517_v50 = vpack.c.bf16 %v719_v47, %v718_v46  ;;  %v725_v53 = vld [vmem:[%s3934_s17 + $0x108] sm:$0xff]  ;;  %v726_v55 = vld [vmem:[%s3934_s17 + $0x110] sm:$0xff] }
  0x52   : > { %3497 = vmatpush3.bf16.msra.mxu1 %v3496_v21  ;;  %3492 = vmatprep.subr.bf16.mxu0 %v3759_v4  ;;  %v3523_v51 = vpack.c.bf16 %v723_v49, %v722_v48  ;;  %v3526_v54 = vpack.c.bf16 %v725_v53, %v724_v52  ;;  %v727_v56 = vld [vmem:[%s3934_s17 + $0x118] sm:$0xff]  ;;  %v728_v58 = vld [vmem:[%s3934_s17 + $0x120] sm:$0xff]  ;;  %v729_v59 = vld [vmem:[%s3934_s17 + $0x128] sm:$0xff] }
  0x53   : > { %3498 = vmatprep.subr.bf16.mxu1 %v3759_v4  ;;  %3285 = vmatprep.mubr.msk.f32.mxu0 %vm3760_vm1, %v3761_v12  ;;  %v3529_v57 = vpack.c.bf16 %v727_v56, %v726_v55  ;;  %v732_v60 = vld [vmem:[%s3934_s17 + $0x140] sm:$0xff]  ;;  %v3532_v61 = vpack.c.bf16 %v729_v59, %v728_v58  ;;  %v733_v62 = vld [vmem:[%s3934_s17 + $0x148] sm:$0xff]  ;;  %v730_v0 = vld [vmem:[%s3934_s17 + $0x130] sm:$0xff] }
  0x54   : > { %3296 = vmatprep.mubr.msk.f32.mxu1 %vm3760_vm1, %v3761_v12  ;;  %v3538_v63 = vpack.c.bf16 %v733_v62, %v732_v60  ;;  %v731_v1 = vld [vmem:[%s3934_s17 + $0x138] sm:$0xff]  ;;  %v734_v2 = vld [vmem:[%s3934_s17 + $0x150] sm:$0xff]  ;;  %v736_v7 = vld [vmem:[%s3934_s17 + $0x160] sm:$0xff] }
  0x55   : > { %3494 = vmatpush3.bf16.msra.mxu0 %v3493_v26  ;;  %v3535_v3 = vpack.c.bf16 %v731_v1, %v730_v0  ;;  %v735_v5 = vld [vmem:[%s3934_s17 + $0x158] sm:$0xff]  ;;  %v737_v8 = vld [vmem:[%s3934_s17 + $0x168] sm:$0xff]  ;;  %v738_v10 = vld [vmem:[%s3934_s17 + $0x170] sm:$0xff] }
  0x56   : > { %3500 = vmatpush3.bf16.msra.mxu1 %v3499_v27  ;;  %3501 = vmatprep.subr.bf16.mxu0 %v3759_v4  ;;  %v3541_v6 = vpack.c.bf16 %v735_v5, %v734_v2  ;;  %v3544_v9 = vpack.c.bf16 %v737_v8, %v736_v7  ;;  %v739_v11 = vld [vmem:[%s3934_s17 + $0x178] sm:$0xff]  ;;  %v3103_v23 = vld [vmem:[%s3944_s15 + $0x4] ss:$0 sm:$0xff]  ;;  %v3104_v25 = vld [vmem:[%s3944_s15 + $0x5] ss:$0 sm:$0xff] }
  0x57   : > { %3507 = vmatprep.subr.bf16.mxu1 %v3759_v4  ;;  %v3547_v13 = vpack.c.bf16 %v739_v11, %v738_v10  ;;  %v3099_v26 = vld [vmem:[%s3944_s15] ss:$0 sm:$0xff]  ;;  %v3105_v34 = vld [vmem:[%s3944_s15 + $0x6] ss:$0 sm:$0xff]  ;;  %v3106_v35 = vld [vmem:[%s3944_s15 + $0x7] ss:$0 sm:$0xff] }
  0x58   : > { %3286 = vmatmul.mubr.msk.f32.vlgmr.msra.gmra.mrb[2].mxu0 %vm824_vm2, %v4007_v19  ;;  %v3102_v42 = vld [vmem:[%s3944_s15 + $0x3] ss:$0 sm:$0xff]  ;;  %v3107_v47 = vld [vmem:[%s3944_s15 + $0x8] ss:$0 sm:$0xff]  ;;  %v3123_v59 = vld [vmem:[%s4388_s21] ss:$0 sm:$0xff] }
  0x59   : > { %3297 = vmatmul.mubr.msk.f32.vlgmr.msra.gmra.mrb[2].mxu1 %vm824_vm2, %v4007_v19  ;;  %3503 = vmatpush3.bf16.msra.mxu0 %v3502_v32  ;;  %s4393_s21 = sld [smem:[#allocation9_spill]] }
  0x5a   : > { %3509 = vmatpush3.bf16.msra.mxu1 %v3508_v33  ;;  %3504 = vmatprep.subr.bf16.mxu0 %v3759_v4  ;;  %v3100_v33 = vld [vmem:[%s3944_s15 + $0x1] ss:$0 sm:$0xff] }
  0x5b   : > { %3510 = vmatprep.subr.bf16.mxu1 %v3759_v4  ;;  %3307 = vmatprep.mubr.msk.f32.mxu0 %vm3760_vm1, %v3761_v12 }
  0x5c   : > { %3318 = vmatprep.mubr.msk.f32.mxu1 %vm3760_vm1, %v3761_v12 }
  0x5d   : > { %3506 = vmatpush3.bf16.msra.mxu0 %v3505_v38  ;;  %v3101_v38 = vld [vmem:[%s3944_s15 + $0x2] ss:$0 sm:$0xff] }
  0x5e   : > { %3512 = vmatpush3.bf16.msra.mxu1 %v3511_v39  ;;  %3513 = vmatprep.subr.bf16.mxu0 %v3759_v4 }
  0x5f   : > { %3519 = vmatprep.subr.bf16.mxu1 %v3759_v4  ;;  %p3149_p1 = scmp.ne.s32.totalorder %s4393_s21, 1 }
  0x60   : > { %3308 = vmatmul.mubr.msk.f32.vlgmr.msra.gmra.mrb[4].mxu0 %vm824_vm2, %v4007_v19 }
  0x61   : > { %3319 = vmatmul.mubr.msk.f32.vlgmr.msra.gmra.mrb[4].mxu1 %vm824_vm2, %v4007_v19  ;;  %3515 = vmatpush3.bf16.msra.mxu0 %v3514_v44 }
  0x62   : > { %3521 = vmatpush3.bf16.msra.mxu1 %v3520_v45  ;;  %3516 = vmatprep.subr.bf16.mxu0 %v3759_v4 }
  0x63   : > { %3522 = vmatprep.subr.bf16.mxu1 %v3759_v4  ;;  %3329 = vmatprep.mubr.msk.f32.mxu0 %vm3760_vm1, %v3761_v12 }
  0x64   : > { %3340 = vmatprep.mubr.msk.f32.mxu1 %vm3760_vm1, %v3761_v12 }
  0x65   : > { %3518 = vmatpush3.bf16.msra.mxu0 %v3517_v50 }
  0x66   : > { %3524 = vmatpush3.bf16.msra.mxu1 %v3523_v51  ;;  %3525 = vmatprep.subr.bf16.mxu0 %v3759_v4  ;;  %v3108_v51 = vld [vmem:[%s3944_s15 + $0x9] ss:$0 sm:$0xff] }
  0x67   : > { %3531 = vmatprep.subr.bf16.mxu1 %v3759_v4 }
  0x68   : > { %3330 = vmatmul.mubr.msk.f32.vlgmr.msra.gmra.mrb[6].mxu0 %vm824_vm2, %v4007_v19 }
  0x69   : > { %3341 = vmatmul.mubr.msk.f32.vlgmr.msra.gmra.mrb[6].mxu1 %vm824_vm2, %v4007_v19  ;;  %3527 = vmatpush3.bf16.msra.mxu0 %v3526_v54 }
  0x6a   : > { %3528 = vmatprep.subr.bf16.mxu0 %v3759_v4  ;;  %3351 = vmatprep.mubr.msk.f32.mxu0 %vm3760_vm1, %v3761_v12 }
  0x6b   : > { %3362 = vmatprep.mubr.msk.f32.mxu1 %vm3760_vm1, %v3761_v12  ;;  %3533 = vmatpush3.bf16.msra.mxu1 %v3532_v61 }
  0x6c   : > { %3534 = vmatprep.subr.bf16.mxu1 %v3759_v4 }
  0x6d   : > { %3530 = vmatpush3.bf16.msra.mxu0 %v3529_v57 }
  0x6e   : > { %3537 = vmatprep.subr.bf16.mxu0 %v3759_v4 }
  0x6f   : > { %3536 = vmatpush3.bf16.msra.mxu1 %v3535_v3 }
  0x70   : > { %3352 = vmatmul.mubr.msk.f32.vlgmr.msra.gmra.mrb[8].mxu0 %vm824_vm2, %v4007_v19  ;;  %3543 = vmatprep.subr.bf16.mxu1 %v3759_v4 }
  0x71   : > { %3539 = vmatpush3.bf16.msra.mxu0 %v3538_v63  ;;  %3373 = vmatprep.mubr.msk.f32.mxu0 %vm3760_vm1, %v3761_v12 }
  0x72   : > { %3540 = vmatprep.subr.bf16.mxu0 %v3759_v4  ;;  %3363 = vmatmul.mubr.msk.f32.vlgmr.msra.gmra.mrb[8].mxu1 %vm824_vm2, %v4007_v19 }
  0x73   : > { %3545 = vmatpush3.bf16.msra.mxu1 %v3544_v9  ;;  %3384 = vmatprep.mubr.msk.f32.mxu1 %vm3760_vm1, %v3761_v12 }
  0x74   : > { %3546 = vmatprep.subr.bf16.mxu1 %v3759_v4 }
  0x75   : > { %3542 = vmatpush3.bf16.msra.mxu0 %v3541_v6 }
  0x76   : > { %3387 = vmatprep.subr.mxu0 %v3761_v12 }
  0x77   : > { %3548 = vmatpush3.bf16.msra.mxu1 %v3547_v13 }
  0x78   : > { %3374 = vmatmul.mubr.msk.f32.vlgmr.msra.gmra.mrb[10].mxu0 %vm824_vm2, %v4007_v19  ;;  %3402 = vmatprep.subr.mxu1 %v3761_v12 }
  0x79   : > { %3389 = vmatprep.mubr.msk.f32.mxu0 %vm3760_vm1, %v3761_v12 }
  0x7a   : > { %3385 = vmatmul.mubr.msk.f32.vlgmr.msra.gmra.mrb[10].mxu1 %vm824_vm2, %v4007_v19 }
  0x7b   : > { %3404 = vmatprep.mubr.msk.f32.mxu1 %vm3760_vm1, %v3761_v12 }
 0x123   : > { %v894_v14 = vpop.f32.mrb[0].mxu0 }
 0x124   : > { %v3265_v15 = vpop.f32.mrb[1].mxu0  ;;  %v964_v16 = vpop.f32.mrb[0].mxu1  ;;  %v895_v32 = vadd.f32 %v3099_v26, %v894_v14 }
 0x125   : > { %v3276_v17 = vpop.f32.mrb[1].mxu1  ;;  %v965_v36 = vadd.f32 %v3100_v33, %v964_v16 }
 0x12b   : > { %v1034_v18 = vpop.f32.mrb[2].mxu0 }
 0x12c   : > { %v3287_v20 = vpop.f32.mrb[3].mxu0  ;;  %v1104_v21 = vpop.f32.mrb[2].mxu1  ;;  %v1035_v45 = vadd.f32 %v3101_v38, %v1034_v18  ;;  %v3109_v38 = vld [vmem:[%s3944_s15 + $0xa] ss:$0 sm:$0xff] }
 0x12d   : > { %v3298_v22 = vpop.f32.mrb[3].mxu1  ;;  %v1105_v46 = vadd.f32 %v3102_v42, %v1104_v21 }
 0x133   : > { %v1174_v24 = vpop.f32.mrb[4].mxu0 }
 0x134   : > { %v1175_v27 = vadd.f32 %v3103_v23, %v1174_v24  ;;  %v3309_v28 = vpop.f32.mrb[5].mxu0  ;;  %v1244_v29 = vpop.f32.mrb[4].mxu1 }
 0x135   : > { %v3320_v30 = vpop.f32.mrb[5].mxu1  ;;  %v1245_v31 = vadd.f32 %v3104_v25, %v1244_v29 }
 0x136   : > { %3388 = vmatpush3.xpose.msk.msra.mxu0 %vm1675_vm3, %v1175_v27 }
 0x137   : > { %3392 = vmatprep.subr.mxu0 %v3761_v12 }
 0x139   : > { %3390 = vmatmul.mubr.msk.f32.vlgmr.msra.gmra.mrb[12].mxu0 %vm1675_vm3, %v895_v32 }
 0x13a   : > { %3393 = vmatpush3.xpose.msk.msra.mxu0 %vm1675_vm3, %v1245_v31  ;;  %3394 = vmatprep.mubr.msk.f32.mxu0 %vm3760_vm1, %v3761_v12 }
 0x13b   : > { %v1314_v37 = vpop.f32.mrb[6].mxu0  ;;  %3397 = vmatprep.subr.mxu0 %v3761_v12 }
 0x13c   : > { %v1315_v39 = vadd.f32 %v3105_v34, %v1314_v37  ;;  %v1384_v40 = vpop.f32.mrb[6].mxu1  ;;  %v3331_v41 = vpop.f32.mrb[7].mxu0 }
 0x13d   : > { %v1385_v43 = vadd.f32 %v3106_v35, %v1384_v40  ;;  %3395 = vmatmul.mubr.msk.f32.vlgmr.msra.gmra.mrb[14].mxu0 %vm1675_vm3, %v965_v36  ;;  %v3342_v44 = vpop.f32.mrb[7].mxu1 }
 0x13e   : > { %3398 = vmatpush3.xpose.msk.msra.mxu0 %vm1675_vm3, %v1315_v39  ;;  %3399 = vmatprep.mubr.msk.f32.mxu0 %vm3760_vm1, %v3761_v12 }
 0x13f   : > { %3403 = vmatpush3.xpose.msk.msra.mxu1 %vm1675_vm3, %v1385_v43  ;;  %3407 = vmatprep.subr.mxu0 %v3761_v12  ;;  %v3110_v43 = vld [vmem:[%s3944_s15 + $0xb] ss:$0 sm:$0xff] }
 0x140   : > { %3412 = vmatprep.subr.mxu1 %v3761_v12 }
 0x141   : > { %3400 = vmatmul.mubr.msk.f32.vlgmr.msra.gmra.mrb[16].mxu0 %vm1675_vm3, %v1035_v45 }
 0x142   : > { %3405 = vmatmul.mubr.msk.f32.vlgmr.msra.gmra.mrb[12].mxu1 %vm1675_vm3, %v1105_v46  ;;  %3409 = vmatprep.mubr.msk.f32.mxu0 %vm3760_vm1, %v3761_v12 }
 0x143   : > { %3414 = vmatprep.mubr.msk.f32.mxu1 %vm3760_vm1, %v3761_v12  ;;  %v1454_v48 = vpop.f32.mrb[8].mxu0 }
 0x144   : > { %v1455_v49 = vadd.f32 %v3107_v47, %v1454_v48  ;;  %v3353_v50 = vpop.f32.mrb[9].mxu0 }
 0x145   : > { %v1524_v52 = vpop.f32.mrb[8].mxu1 }
 0x146   : > { %3408 = vmatpush3.msra.mxu0 %v1455_v49  ;;  %v1525_v53 = vadd.f32 %v3108_v51, %v1524_v52  ;;  %v3364_v54 = vpop.f32.mrb[9].mxu1  ;;  %v2316_v51 = vld [vmem:[%s3939_s24] sm:$0xff]  ;;  %v2317_v52 = vld [vmem:[%s3939_s24 + $0x8] sm:$0xff] }
 0x147   : > { %3417 = vmatprep.subr.mxu0 %v3761_v12 }
 0x148   : > { %3413 = vmatpush3.msra.mxu1 %v1525_v53  ;;  %v2318_v53 = vld [vmem:[%s3939_s24 + $0x10] sm:$0xff] }
 0x149   : > { %3422 = vmatprep.subr.mxu1 %v3761_v12 }
 0x14b   : > { %v4146_v55 = vpop.f32.mrb[10].mxu0 }
 0x14c   : > { %v3375_v56 = vpop.f32.mrb[11].mxu0  ;;  %v1595_v42 = vadd.f32 %v3109_v38, %v4146_v55 }
 0x14d   : > { %v4149_v57 = vpop.f32.mrb[10].mxu1  ;;  %v2319_v56 = vld [vmem:[%s3939_s24 + $0x18] sm:$0xff] }
 0x14e   : > { %v3386_v58 = vpop.f32.mrb[11].mxu1  ;;  %v1665_v46 = vadd.f32 %v3110_v43, %v4149_v57  ;;  %v3141_v43 = vld [vmem:[%s4390_s18] ss:$0 sm:$0xff] }
 0x20c   : > { %v1748_v60 = vpop.f32.mrb[12].mxu0 }
 0x20d   : > { %v1749_v61 = vadd.f32 %v3123_v59, %v1748_v60  ;;  %v3391_v62 = vpop.f32.mrb[13].mxu0 }
 0x20f   : > { %v1980_v63 = vsel %vm1675_vm3, %v1749_v61, -inf }
 0x210   : > { %1981 = vmax.xlane.f32.xlu0 %v1980_v63  ;;  %v1824_v0 = vpop.f32.mrb[14].mxu0 }
 0x211   : > { %v1825_v1 = vadd.f32 %v3123_v59, %v1824_v0  ;;  %v3396_v2 = vpop.f32.mrb[15].mxu0 }
 0x213   : > { %v1983_v3 = vsel %vm1675_vm3, %v1825_v1, -inf }
 0x214   : > { %1984 = vmax.xlane.f32.xlu0 %v1983_v3  ;;  %v1900_v5 = vpop.f32.mrb[16].mxu0 }
 0x215   : > { %v1976_v6 = vpop.f32.mrb[12].mxu1  ;;  %v1901_v7 = vadd.f32 %v3123_v59, %v1900_v5  ;;  %v3401_v8 = vpop.f32.mrb[17].mxu0 }
 0x216   : > { %v3406_v9 = vpop.f32.mrb[13].mxu1  ;;  %v1977_v10 = vadd.f32 %v3123_v59, %v1976_v6 }
 0x217   : > { %v1986_v11 = vsel %vm1675_vm3, %v1901_v7, -inf }
 0x218   : > { %1987 = vmax.xlane.f32.xlu1 %v1986_v11  ;;  %v1989_v13 = vsel %vm1675_vm3, %v1977_v10, -inf }
 0x21c   : > { %1990 = vmax.xlane.f32.xlu1 %v1989_v13 }
 0x29d   : > { %v1982_v14 = vpop.xlane.xlu0 %1981 }
 0x29e   : > { %v1992_v15 = vsub.f32 %v1749_v61, %v1982_v14 }
 0x2a0   : > { %v1996_v16 = vmul.f32 1.442695, %v1992_v15 }
 0x2a1   : > { %v1985_v17 = vpop.xlane.xlu0 %1984 }
 0x2a2   : > { %3643 = vpow2.f32 %v1996_v16  ;;  %v1993_v18 = vsub.f32 %v1825_v1, %v1985_v17 }
 0x2a4   : > { %v1998_v20 = vmul.f32 1.442695, %v1993_v18 }
 0x2a5   : > { %v1988_v21 = vpop.xlane.xlu1 %1987 }
 0x2a6   : > { %3645 = vpow2.f32 %v1998_v20  ;;  %v1994_v22 = vsub.f32 %v1901_v7, %v1988_v21 }
 0x2a8   : > { %v2000_v23 = vmul.f32 1.442695, %v1994_v22 }
 0x2a9   : > { %v1991_v24 = vpop.xlane.xlu1 %1990 }
 0x2aa   : > { %3647 = vpow2.f32 %v2000_v23  ;;  %v1995_v25 = vsub.f32 %v1977_v10, %v1991_v24 }
 0x2ac   : > { %v3644_v26 = vpop.eup %3643  ;;  %v2002_v27 = vmul.f32 1.442695, %v1995_v25  ;;  %v2658_v25 = vld [vmem:[%s3961_s4] sm:$0xff] }
 0x2ad   : > { %v2004_v28 = vsel %vm1675_vm3, %v3644_v26, 0.0 }
 0x2ae   : > { %3649 = vpow2.f32 %v2002_v27  ;;  %2005 = vadd.xlane.f32.xlu0 %v2004_v28  ;;  %v2661_v28 = vld [vmem:[%s3961_s4 + $0x18] sm:$0xff] }
 0x2b0   : > { %v3646_v29 = vpop.eup %3645 }
 0x2b1   : > { %v2007_v30 = vsel %vm1675_vm3, %v3646_v29, 0.0 }
 0x2b2   : > { %2008 = vadd.xlane.f32.xlu1 %v2007_v30  ;;  %v2662_v30 = vld [vmem:[%s3975_s30] sm:$0xff] }
 0x2b4   : > { %v3648_v31 = vpop.eup %3647 }
 0x2b5   : > { %v2010_v32 = vsel %vm1675_vm3, %v3648_v31, 0.0 }
 0x2b6   : > { %2011 = vadd.xlane.f32.xlu0 %v2010_v32  ;;  %v2664_v32 = vld [vmem:[%s3975_s30 + $0x10] sm:$0xff] }
 0x2b8   : > { %v3650_v33 = vpop.eup %3649 }
 0x2b9   : > { %v2013_v34 = vsel %vm1675_vm3, %v3650_v33, 0.0 }
 0x2ba   : > { %2014 = vadd.xlane.f32.xlu1 %v2013_v34  ;;  %v2665_v34 = vld [vmem:[%s3975_s30 + $0x18] sm:$0xff] }
 0x33b   : > { %v2006_v35 = vpop.xlane.xlu0 %2005 }
 0x33c   : > { %3651 = vrcp.f32 %v2006_v35  ;;  %v3559_v35 = vpack.c.bf16 %v2665_v34, %v2664_v32 }
 0x33f   : > { %v2009_v36 = vpop.xlane.xlu1 %2008 }
 0x340   : > { %3653 = vrcp.f32 %v2009_v36  ;;  %v2666_v36 = vld [vmem:[%s3975_s30 + $0x20] sm:$0xff] }
 0x343   : > { %v2012_v37 = vpop.xlane.xlu0 %2011 }
 0x344   : > { %3655 = vrcp.f32 %v2012_v37  ;;  %v2667_v37 = vld [vmem:[%s3975_s30 + $0x28] sm:$0xff] }
 0x345   : > { %v3562_v38 = vpack.c.bf16 %v2667_v37, %v2666_v36 }
 0x346   : > { %v3652_v39 = vpop.eup %3651 }
 0x347   : > { %v2020_v40 = vmul.f32 %v3652_v39, %v3644_v26  ;;  %v2015_v41 = vpop.xlane.xlu1 %2014  ;;  %v2659_v26 = vld [vmem:[%s3961_s4 + $0x8] sm:$0xff] }
 0x348   : > { %3657 = vrcp.f32 %v2015_v41  ;;  %v3550_v27 = vpack.c.bf16 %v2659_v26, %v2658_v25 }
 0x349   : > { %3410 = vmatmul.mubr.msk.f32.vlgmr.msra.gmra.mrb[18].mxu0 %vm1675_vm3, %v2020_v40 }
 0x34a   : > { %v3654_v44 = vpop.eup %3653  ;;  %3418 = vmatpush3.msra.mxu0 %v1595_v42  ;;  %3419 = vmatprep.mubr.msk.f32.mxu0 %vm3760_vm1, %v3761_v12 }
 0x34b   : > { %v2021_v45 = vmul.f32 %v3654_v44, %v3646_v29  ;;  %3427 = vmatprep.subr.mxu0 %v3761_v12 }
 0x34d   : > { %3415 = vmatmul.mubr.msk.f32.vlgmr.msra.gmra.mrb[14].mxu1 %vm1675_vm3, %v2021_v45  ;;  %v3142_v45 = vld [vmem:[%s4391_s14] ss:$0 sm:$0xff] }
 0x34e   : > { %v3656_v47 = vpop.eup %3655  ;;  %3423 = vmatpush3.msra.mxu1 %v1665_v46  ;;  %3424 = vmatprep.mubr.msk.f32.mxu1 %vm3760_vm1, %v3761_v12 }
 0x34f   : > { %v2022_v48 = vmul.f32 %v3656_v47, %v3648_v31  ;;  %3432 = vmatprep.subr.mxu1 %v3761_v12  ;;  %v2663_v31 = vld [vmem:[%s3975_s30 + $0x8] sm:$0xff]  ;;  %v2668_v47 = vld [vmem:[%s3975_s30 + $0x30] sm:$0xff] }
 0x351   : > { %3420 = vmatmul.mubr.msk.f32.vlgmr.msra.gmra.mrb[20].mxu0 %vm1675_vm3, %v2022_v48  ;;  %v2669_v48 = vld [vmem:[%s3975_s30 + $0x38] sm:$0xff] }
 0x352   : > { %v3658_v49 = vpop.eup %3657  ;;  %3429 = vmatprep.mubr.msk.f32.mxu0 %vm3760_vm1, %v3761_v12  ;;  %3428 = vmatpush3.msra.mxu0 %v2316_v51 }
 0x353   : > { %v2023_v50 = vmul.f32 %v3658_v49, %v3650_v33  ;;  %3437 = vmatprep.subr.mxu0 %v3761_v12  ;;  %v3556_v33 = vpack.c.bf16 %v2663_v31, %v2662_v30  ;;  %v3565_v49 = vpack.c.bf16 %v2669_v48, %v2668_v47 }
 0x355   : > { %3425 = vmatmul.mubr.msk.f32.vlgmr.msra.gmra.mrb[16].mxu1 %vm1675_vm3, %v2023_v50  ;;  %v3143_v50 = vld [vmem:[%s669_s22] ss:$0 sm:$0xff] }
 0x356   : > { %3434 = vmatprep.mubr.msk.f32.mxu1 %vm3760_vm1, %v3761_v12  ;;  %3433 = vmatpush3.msra.mxu1 %v2317_v52 }
 0x357   : > { %3442 = vmatprep.subr.mxu1 %v3761_v12 }
 0x41c   : > { %v2093_v54 = vpop.f32.mrb[18].mxu0 }
 0x41d   : > { %v3411_v55 = vpop.f32.mrb[19].mxu0  ;;  %3430 = vmatmul.mubr.msk.f32.vlgmr.msra.gmra.mrb[22].mxu0 %vm1675_vm3, %v2093_v54 }
 0x41e   : > { %3438 = vmatpush3.msra.mxu0 %v2318_v53  ;;  %3439 = vmatprep.mubr.msk.f32.mxu0 %vm3760_vm1, %v3761_v12  ;;  %v3145_v55 = vld [vmem:[%s677_s0] ss:$0 sm:$0xff] }
 0x41f   : > { %3549 = vmatprep.subr.bf16.mxu0 %v3759_v4 }
 0x420   : > { %v2166_v57 = vpop.f32.mrb[14].mxu1 }
 0x421   : > { %v3416_v58 = vpop.f32.mrb[15].mxu1  ;;  %3435 = vmatmul.mubr.msk.f32.vlgmr.msra.gmra.mrb[18].mxu1 %vm1675_vm3, %v2166_v57 }
 0x422   : > { %3443 = vmatpush3.msra.mxu1 %v2319_v56  ;;  %3444 = vmatprep.mubr.msk.f32.mxu1 %vm3760_vm1, %v3761_v12 }
 0x423   : > { %3555 = vmatprep.subr.bf16.mxu1 %v3759_v4 }
 0x424   : > { %v2239_v59 = vpop.f32.mrb[20].mxu0 }
 0x425   : > { %v3421_v60 = vpop.f32.mrb[21].mxu0  ;;  %3440 = vmatmul.mubr.msk.f32.vlgmr.msra.gmra.mrb[24].mxu0 %vm1675_vm3, %v2239_v59 }
 0x426   : > { %3455 = vmatprep.mubr.msk.f32.mxu0 %vm3760_vm1, %v3761_v12  ;;  %3551 = vmatpush3.bf16.msra.mxu0 %v3550_v27 }
 0x427   : > { %3552 = vmatprep.subr.bf16.mxu0 %v3759_v4 }
 0x428   : > { %v2312_v61 = vpop.f32.mrb[16].mxu1 }
 0x429   : > { %v3426_v62 = vpop.f32.mrb[17].mxu1  ;;  %3445 = vmatmul.mubr.msk.f32.vlgmr.msra.gmra.mrb[20].mxu1 %vm1675_vm3, %v2312_v61 }
 0x42a   : > { %3474 = vmatprep.mubr.msk.f32.mxu1 %vm3760_vm1, %v3761_v12  ;;  %v3140_v12 = vld [vmem:[%s4389_s28] ss:$0 sm:$0xff]  ;;  %3557 = vmatpush3.bf16.msra.mxu1 %v3556_v33 }
 0x42b   : > { %3558 = vmatprep.subr.bf16.mxu1 %v3759_v4 }
 0x42e   : > { %3560 = vmatpush3.bf16.msra.mxu1 %v3559_v35 }
 0x42f   : > { %3561 = vmatprep.subr.bf16.mxu1 %v3759_v4 }
 0x432   : > { %3563 = vmatpush3.bf16.msra.mxu1 %v3562_v38 }
 0x433   : > { %3564 = vmatprep.subr.bf16.mxu1 %v3759_v4 }
 0x436   : > { %3566 = vmatpush3.bf16.msra.mxu1 %v3565_v49 }
 0x4f0   : > { %v2389_v63 = vpop.f32.mrb[22].mxu0 }
 0x4f1   : > { %v3431_v0 = vpop.f32.mrb[23].mxu0  ;;  %v2612_v2 = vsel %vm824_vm2, %v2389_v63, 0.0 }
 0x4f4   : > { %v2462_v1 = vpop.f32.mrb[18].mxu1 }
 0x4f5   : > { %v2613_v3 = vsel %vm824_vm2, %v2462_v1, 0.0  ;;  %v3436_v5 = vpop.f32.mrb[19].mxu1 }
 0x4f6   : > { %v2614_v6 = vadd.f32 %v2613_v3, %v2612_v2 }
 0x4f8   : > { %v2535_v7 = vpop.f32.mrb[24].mxu0 }
 0x4f9   : > { %v2615_v8 = vsel %vm824_vm2, %v2535_v7, 0.0  ;;  %v3441_v9 = vpop.f32.mrb[25].mxu0  ;;  %v3147_v7 = vld [vmem:[%s680_s13] ss:$0 sm:$0xff] }
 0x4fa   : > { %v2616_v10 = vadd.f32 %v2615_v8, %v2614_v6  ;;  %v3148_v9 = vld [vmem:[%s683_s8] ss:$0 sm:$0xff] }
 0x4fc   : > { %v2608_v11 = vpop.f32.mrb[20].mxu1 }
 0x4fd   : > { %v2617_v13 = vsel %vm824_vm2, %v2608_v11, 0.0  ;;  %v3446_v14 = vpop.f32.mrb[21].mxu1 }
 0x4fe   : > { %v2618_v15 = vadd.f32 %v2617_v13, %v2616_v10 }
 0x500   : > { %v2626_v16 = vadd.f32 %v3140_v12, %v2618_v15 }
 0x502   : > { %v2627_v17 = vadd.f32 %v2626_v16, %v4007_v19  ;;  %v2660_v19 = vld [vmem:[%s3961_s4 + $0x10] sm:$0xff] }
 0x503   : > { %v3553_v29 = vpack.c.bf16 %v2661_v28, %v2660_v19 }
 0x504   : > { %v2630_v18 = vsel %vm824_vm2, %v2627_v17, 0.0 }
 0x505   : > { %2631 = vadd.xlane.f32.xlu0 %v2630_v18  ;;  %3554 = vmatpush3.bf16.msra.mxu0 %v3553_v29 }
 0x592   : > { %v2632_v20 = vpop.xlane.xlu0 %2631 }
 0x593   : > { %v2634_v21 = vmul.f32 0.03125, %v2632_v20 }
 0x595   : > { %v2635_v22 = vsub.f32 %v2627_v17, %v2634_v21 }
 0x597   : > { %v2636_v23 = vmul.f32 %v2635_v22, %v2635_v22 }
 0x599   : > { %v2637_v24 = vsel %vm824_vm2, %v2636_v23, 0.0 }
 0x59a   : > { %2638 = vadd.xlane.f32.xlu1 %v2637_v24 }
 0x627   : > { %v2639_v39 = vpop.xlane.xlu1 %2638 }
 0x628   : > { %v2640_v40 = vmul.f32 0.03125, %v2639_v39 }
 0x62a   : > { %v2641_v41 = vadd.f32 1e-05, %v2640_v40 }
 0x62c   : > { %3659 = vrsqrt.f32 %v2641_v41 }
 0x636   : > { %v3660_v42 = vpop.eup %3659 }
 0x637   : > { %v2643_v44 = vmul.f32 %v3660_v42, %v2635_v22 }
 0x639   : > { %v2650_v46 = vmul.f32 %v3141_v43, %v2643_v44 }
 0x63b   : > { %v2657_v4 = vadd.f32 %v3142_v45, %v2650_v46 }
 0x63d   : > { %3456 = vmatmul.mubr.msk.f32.vlgmr.msra.gmra.mrb[26].mxu0 %vm824_vm2, %v2657_v4 }
 0x710   : > { %v2746_v51 = vpop.f32.mrb[26].mxu0 }
 0x711   : > { %v2747_v52 = vadd.f32 %v3143_v50, %v2746_v51  ;;  %v3457_v53 = vpop.f32.mrb[27].mxu0 }
 0x713   : > { %v2750_v54 = vmax.f32 %v2747_v52, 0.0 }
 0x715   : > { %3475 = vmatmul.mubr.msk.f32.vlgmr.msra.gmra.mrb[22].mxu1 %vm2758_vm4, %v2750_v54 }
 0x7e8   : > { %v2828_v56 = vpop.f32.mrb[22].mxu1 }
 0x7e9   : > { %v2829_v57 = vadd.f32 %v3145_v55, %v2828_v56  ;;  %v3476_v58 = vpop.f32.mrb[23].mxu1 }
 0x7eb   : > { %v2832_v59 = vadd.f32 %v2829_v57, %v2657_v4 }
 0x7ed   : > { %v2835_v60 = vsel %vm824_vm2, %v2832_v59, 0.0 }
 0x7ee   : > { %2836 = vadd.xlane.f32.xlu0 %v2835_v60 }
 0x87b   : > { %v2837_v61 = vpop.xlane.xlu0 %2836 }
 0x87c   : > { %v2838_v62 = vmul.f32 0.03125, %v2837_v61 }
 0x87e   : > { %v2839_v63 = vsub.f32 %v2832_v59, %v2838_v62 }
 0x880   : > { %v2840_v0 = vmul.f32 %v2839_v63, %v2839_v63 }
 0x882   : > { %v2841_v1 = vsel %vm824_vm2, %v2840_v0, 0.0 }
 0x883   : > { %2842 = vadd.xlane.f32.xlu1 %v2841_v1 }
 0x910   : > { %v2843_v2 = vpop.xlane.xlu1 %2842 }
 0x911   : > { %v2844_v3 = vmul.f32 0.03125, %v2843_v2 }
 0x913   : > { %v2845_v5 = vadd.f32 1e-05, %v2844_v3 }
 0x915   : > { %3661 = vrsqrt.f32 %v2845_v5 }
 0x91f   : > { %v3662_v6 = vpop.eup %3661 }
 0x920   : > { %v2847_v8 = vmul.f32 %v3662_v6, %v2839_v63  ;;  %2866 = sbr.rel (%p3149_p1) target bundleno = 2343 (0x927), region = 84 }
 0x922   : > { %v2854_v10 = vmul.f32 %v3147_v7, %v2847_v8 }
 0x924   : > { %v2861_v11 = vadd.f32 %v3148_v9, %v2854_v10 }
 0x926   : > { %2862 = vst.msk [vmem:[#allocation2] sm:$0xff] %vm824_vm2, %v2861_v11  ;;  %2867 = vst.msk [vmem:[%s631_s19] sm:$0xff] (!%p3149_p1), %vm824_vm2, %v2861_v11 }
 0x927 PF: > { %s4394_s24 = sld [smem:[#allocation10_spill]]  ;;  %s4395_s13 = sld [smem:[#allocation7_spill]] }
 0x928   : > { %s4397_s8 = sld [smem:[#allocation27_spill]]  ;;  %s2882_s18 = sshll.u32 %s631_s19, 4  ;;  %s2883_s18 = int_to_ptr.vmem [resolvable:$true] %s2882_s18 }
 0x929   : > { %s3663_s14 = scalar_lea.vmem %s2883_s18, 128  ;;  %s3762_s16 = smov [#allocation3]  }
 0x92a   : > { %p3664_p2 = scmp.ne.s32.totalorder %s2883_s18, %s3663_s14  ;;  %s3667_s20 = sshll.u32 %s3762_s16, 4  ;;  %s3668_s20 = int_to_ptr.vmem [resolvable:$false] %s3667_s20 }
 0x92b   : > { %s3669_s2 = scalar_lea.vmem %s3668_s20, 256  ;;  %p3670_p6 = scmp.lt.s32.totalorder %s2883_s18, %s3668_s20 }
 0x92c   : > { %p3665_p4 = pnand %p3664_p2, %p3887_p3  ;;  %p3671_p7 = scmp.lt.s32.totalorder %s3669_s2, %s3663_s14 }
 0x92d   : > { %s3151_s28 = sshll.u32 %s4394_s24, 7  ;;  %s4398_s29 = sand.u32 1, %s4395_s13  }
 0x92e   : > { %s4272_s1 = scalar_lea.hbm %s4397_s8, %s3151_s28  ;;  %s2869_s25 = scalar_lea.sflag [#allocation4], %s4398_s29 }
 0x92f   : > { %p3666_p5 = pneg %p3665_p4  ;;  %p3672_p8 = por %p3671_p7, %p3670_p6 }
 0x931   : > { %p3673_p10 = pnand %p3672_p8, %p3666_p5 }
 0x933   : > { %3676 = shalt.err (!%p3673_p10)
}
 0x934   : > { %s3677_s23 = scalar_lea.hbm %s4272_s1, 128  ;;  %s3681_s0 = scalar_lea.hbm %s4397_s8, 256 }
 0x935   : > { %p3678_p11 = scmp.ne.s32.totalorder %s4272_s1, %s3677_s23  ;;  %p3682_p0 = scmp.lt.u32.totalorder %s4272_s1, %s4397_s8 }
 0x936   : > { %p3683_p1 = scmp.lt.u32.totalorder %s3681_s0, %s3677_s23  ;;  %p3685_p4 = scmp.lt.u32.totalorder %s3677_s23, %s4272_s1 }
 0x937   : > { %p3679_p12 = pnand %p3678_p11, %p3887_p3 }
 0x938   : > { %p3684_p2 = por %p3683_p1, %p3682_p0 }
 0x939   : > { %p3680_p13 = pneg %p3679_p12 }
 0x93a   : > { %p3686_p5 = por %p3685_p4, %p3684_p2 }
 0x93c   : > { %p3687_p6 = pnand %p3686_p5, %p3680_p13 }
 0x93e   : > { %3690 = shalt.err (!%p3687_p6)
}
 0x93f   : > { %3569 = dma.vmem_to_hbm [thread:$0]  (%p3887_p3), %s2883_s18, 128, %s4272_s1, %s2869_s25  }
 0x940 PF: > { %s4399_s17 = sld [smem:[#allocation13_spill]]  ;;  %s4400_s26 = sld [smem:[#allocation6_spill]] }
 0x946   : > { %p3575_p7 = scmp.ge.s32.totalorder %s4399_s17, 2  ;;  %s2894_s24 = sand.u32 1, %s4400_s26  }
 0x947   : > { %s2895_s13 = scalar_lea.sflag [#allocation4], %s2894_s24 }
 0x948   : > { %p3572_p8 = pnand %p3575_p7, %p3897_p9 }
 0x94a   : > { %3724 = dma.done.wait (!%p3572_p8), %s2895_s13, 128  }
 0x94b   : > { %3726 = vsyncadd (!%p3572_p8), %s2895_s13, 4294967168  ;;  %s27_s20 = sadd.s32 1, %s4399_s17   ;;  %s4402_s29 = sld [smem:[#allocation7_spill]] }
 0x94c   : > { %p24_p10 = scmp.ge.s32.totalorder %s27_s20, 6   ;;  %s4403_s30 = sld [smem:[#allocation8_spill]] }
 0x94d   : > { %s4404_s15 = sld [smem:[#allocation18_spill]]  ;;  %s4405_s16 = sld [smem:[#allocation11_spill]] }
 0x94e   : > { %s4406_s17 = sld [smem:[#allocation12_spill]]  ;;  %s4407_s18 = sld [smem:[#allocation14_spill]] }
 0x94f   : > { %s4408_s19 = sld [smem:[#allocation16_spill]]  ;;  %26 = sbr.rel (!%p24_p10) target bundleno = 14 (0xe), region = 158 }
 0x956   :  { %2900 = vsyncpa [#allocation4], 1 }
 0x957   :  { %2902 = vsyncpa [#allocation4 + $0x1], 1 }

</bundles_post_ra>
